<compile_context>
chip_gen: v6e
topology: v6e:2x2x1
jax: 0.10.0
libtpu: 0.0.40
codegen_flags: <defaults>
</compile_context>

<pallas_src>
import functools

import jax
import jax.numpy as jnp
from jax.experimental import pallas as pl
from jax.experimental.pallas import tpu as pltpu


def _wwl_kernel(a_ref, x_ref, out_ref, *, num_layers):
    """Single invocation: runs all WL layers on VMEM-resident A' and x.

    a_ref   : (N, N)  bf16, folded adjacency  A' = 0.5*A_norm + 0.5*I
    x_ref   : (N, F)  initial node features
    out_ref : (N, num_layers * F)  concatenated per-layer outputs
    """
    a = a_ref[...]                                # (N, N) bf16, read once
    cur = x_ref[...].astype(jnp.float32)          # f32 carry across layers

    outs = []
    for _ in range(num_layers):                   # static unroll (few layers)
        # Pure MXU op: bf16 x bf16 -> f32 accumulation.
        cur = jnp.dot(a, cur.astype(jnp.bfloat16),
                      preferred_element_type=jnp.float32)
        outs.append(cur)

    # One unmasked, lane-dense (N, L*F) store.
    out_ref[...] = jnp.concatenate(outs, axis=-1).astype(out_ref.dtype)


def _folded_adjacency(edge_index, num_nodes):
    """A' = 0.5 * row-normalized adjacency + 0.5 * I  (plain-JAX glue)."""
    src, dst = edge_index[0], edge_index[1]
    adj = jnp.zeros((num_nodes, num_nodes), jnp.float32).at[dst, src].add(1.0)
    deg = jnp.sum(adj, axis=1, keepdims=True)
    a_norm = jnp.where(deg > 0, adj / jnp.maximum(deg, 1.0), 0.0)
    return 0.5 * a_norm + 0.5 * jnp.eye(num_nodes, dtype=jnp.float32)


def wwl_forward(x, edge_index, num_layers):
    """x: (N, F) float32, edge_index: (2, E) int32 -> (N, num_layers * F)."""
    N, F = x.shape
    a_fold = _folded_adjacency(edge_index, N).astype(jnp.bfloat16)

    kernel = functools.partial(_wwl_kernel, num_layers=num_layers)
    out = pl.pallas_call(
        kernel,
        out_shape=jax.ShapeDtypeStruct((N, num_layers * F), x.dtype),
        in_specs=[
            pl.BlockSpec(memory_space=pltpu.MemorySpace.VMEM),  # A' resident
            pl.BlockSpec(memory_space=pltpu.MemorySpace.VMEM),  # x resident
        ],
        out_specs=pl.BlockSpec(memory_space=pltpu.MemorySpace.VMEM),
    )(a_fold, x)
    return out


def wwl_reference_f32(x, edge_index, num_layers):
    """Exact (f32) reference of the module semantics."""
    N, _ = x.shape
    a_fold = _folded_adjacency(edge_index, N)
    xs, cur = [], x
    for _ in range(num_layers):
        cur = a_fold @ cur
        xs.append(cur)
    return jnp.concatenate(xs, axis=-1)


def wwl_reference_bf16(x, edge_index, num_layers):
    """Reference with the same bf16-operand / f32-accumulate arithmetic."""
    N, _ = x.shape
    a_fold = _folded_adjacency(edge_index, N).astype(jnp.bfloat16)
    xs, cur = [], x.astype(jnp.float32)
    for _ in range(num_layers):
        cur = jnp.dot(a_fold, cur.astype(jnp.bfloat16),
                      preferred_element_type=jnp.float32)
        xs.append(cur)
    return jnp.concatenate(xs, axis=-1)


if __name__ == "__main__":
    key = jax.random.PRNGKey(0)
    k_x, k_src, k_dst = jax.random.split(key, 3)

    NUM_LAYERS = 3
    N = 128     # nodes (fills the MXU row dimension)
    F = 128     # node feature dim (lane-aligned)
    E = 512     # edges

    x = jax.random.normal(k_x, (N, F), dtype=jnp.float32)
    src = jax.random.randint(k_src, (E,), 0, N, dtype=jnp.int32)
    dst = jax.random.randint(k_dst, (E,), 0, N, dtype=jnp.int32)
    edge_index = jnp.stack([src, dst], axis=0)  # (2, E): row 0 = src, row 1 = dst

    out = jax.block_until_ready(wwl_forward(x, edge_index, NUM_LAYERS))
    assert out.shape == (N, NUM_LAYERS * F), out.shape

    # Tight check against a same-arithmetic (bf16 operand, f32 accum) reference.
    ref_bf16 = jax.block_until_ready(wwl_reference_bf16(x, edge_index, NUM_LAYERS))
    assert jnp.allclose(out, ref_bf16, atol=1e-3, rtol=1e-3), "mismatch vs bf16 reference"

    # Loose check against the exact f32 module semantics (bf16 MXU rounding,
    # layer-bounded).
    ref_f32 = jax.block_until_ready(wwl_reference_f32(x, edge_index, NUM_LAYERS))
    assert jnp.allclose(out, ref_f32, atol=5e-2, rtol=5e-2), "mismatch vs f32 reference"

    print("KERNEL_OK")
</pallas_src>

<mosaic_0001>
module attributes {stable_mosaic.version = 11 : i64} {
  func.func @_wwl_kernel(%arg0: memref<128x128xbf16, #tpu.memory_space<vmem>>, %arg1: memref<128x128xf32, #tpu.memory_space<vmem>>, %arg2: memref<128x384xf32, #tpu.memory_space<vmem>>) attributes {dimension_semantics = [], scalar_prefetch = 0 : i64, scratch_operands = 0 : i64, tpu.core_type = #tpu.core_type<tc>} {
    %c0 = arith.constant 0 : index
    %c0_0 = arith.constant 0 : index
    %0 = vector.load %arg0[%c0, %c0_0] : memref<128x128xbf16, #tpu.memory_space<vmem>>, vector<128x128xbf16>
    %c0_1 = arith.constant 0 : index
    %c0_2 = arith.constant 0 : index
    %1 = vector.load %arg1[%c0_1, %c0_2] : memref<128x128xf32, #tpu.memory_space<vmem>>, vector<128x128xf32>
    %2 = arith.truncf %1 : vector<128x128xf32> to vector<128x128xbf16>
    %cst = arith.constant dense<0.000000e+00> : vector<128x128xf32>
    %3 = tpu.matmul %0, %2, %cst {dimension_numbers = #tpu.dot_dimension_numbers<[1], [0], [0], [1], [0, 0, 1, 1], [], []>} : vector<128x128xbf16>, vector<128x128xbf16>, vector<128x128xf32> -> vector<128x128xf32>
    %4 = arith.truncf %3 : vector<128x128xf32> to vector<128x128xbf16>
    %cst_3 = arith.constant dense<0.000000e+00> : vector<128x128xf32>
    %5 = tpu.matmul %0, %4, %cst_3 {dimension_numbers = #tpu.dot_dimension_numbers<[1], [0], [0], [1], [0, 0, 1, 1], [], []>} : vector<128x128xbf16>, vector<128x128xbf16>, vector<128x128xf32> -> vector<128x128xf32>
    %6 = arith.truncf %5 : vector<128x128xf32> to vector<128x128xbf16>
    %cst_4 = arith.constant dense<0.000000e+00> : vector<128x128xf32>
    %7 = tpu.matmul %0, %6, %cst_4 {dimension_numbers = #tpu.dot_dimension_numbers<[1], [0], [0], [1], [0, 0, 1, 1], [], []>} : vector<128x128xbf16>, vector<128x128xbf16>, vector<128x128xf32> -> vector<128x128xf32>
    %8 = tpu.concatenate %3, %5, %7 in 1 : vector<128x128xf32>, vector<128x128xf32>, vector<128x128xf32> -> vector<128x384xf32>
    %c0_5 = arith.constant 0 : index
    %c0_6 = arith.constant 0 : index
    %9 = vector.load %arg2[%c0_5, %c0_6] : memref<128x384xf32, #tpu.memory_space<vmem>>, vector<128x384xf32>
    tpu.vector_store %arg2[%c0_5, %c0_6], %8 {strides = array<i32>} : memref<128x384xf32, #tpu.memory_space<vmem>>, vector<128x384xf32>,
    return
  }
}

</mosaic_0001>

<bundles_post_ra>
// kernel: tpu_custom_call.1
= control target key start
LH: loop header
LB: loop body
LE: loop exit
PB: predicated region body
PF: predicated region fallthrough
CT: control target
= control target key end

     0   :  { %7 = vsyncpa [#allocation3], 0  ;;  %s825_s0 = inlined_call_operand.hbm [shape: bf16[128,128], index: 0, kind: input, shape index: {}]   ;;  %s826_s1 = inlined_call_operand.hbm [shape: f32[128,128], index: 1, kind: input, shape index: {}]   ;;  %s827_s2 = inlined_call_operand.hbm [shape: f32[128,384], index: 2, kind: output, shape index: {}]  }
   0x1   :  { %8 = vsyncpa [#allocation6], 0 }
   0x2   :  { %9 = vsyncpa [#allocation4], 0  ;;  %s753_s9 = smov [#allocation2]  }
   0x3   :  { %s15_s10 = sshll.u32 %s753_s9, 4  ;;  %s16_s10 = int_to_ptr.vmem [resolvable:$true] %s15_s10 }
   0x4   :  { %s695_s11 = scalar_lea.vmem %s16_s10, 1024  ;;  %p700_p1 = scmp.lt.s32.totalorder %s16_s10, %s16_s10 }
   0x5   :  { %p696_p0 = scmp.ne.s32.totalorder %s16_s10, %s695_s11  ;;  %p701_p2 = scmp.lt.s32.totalorder %s695_s11, %s695_s11 }
   0x7   :  { %p702_p3 = por %p701_p2, %p700_p1 }
   0x9   :  { %p703_p4 = pnand %p702_p3, %p696_p0 }
   0xb   :  { %706 = shalt.err (!%p703_p4)
}
   0xc   :  { %s754_s12 = smov 64   ;;  %s755_s13 = smov 4  }
   0xd   :  { %21 = dma.hbm_to_vmem [thread:$0]  %s825_s0, 1024, %s16_s10, [#allocation3], %s754_s12, %s754_s12, %s755_s13  }
   0xe   :  { %s756_s16 = smov [#allocation5]  }
   0xf   :  { %s27_s17 = sshll.u32 %s756_s16, 4  ;;  %s28_s17 = int_to_ptr.vmem [resolvable:$true] %s27_s17 }
  0x10   :  { %s715_s18 = scalar_lea.vmem %s28_s17, 2048  ;;  %p720_p6 = scmp.lt.s32.totalorder %s28_s17, %s28_s17 }
  0x11   :  { %p716_p5 = scmp.ne.s32.totalorder %s28_s17, %s715_s18  ;;  %p721_p7 = scmp.lt.s32.totalorder %s715_s18, %s715_s18 }
  0x13   :  { %p722_p8 = por %p721_p7, %p720_p6 }
  0x15   :  { %p723_p9 = pnand %p722_p8, %p716_p5 }
  0x17   :  { %726 = shalt.err (!%p723_p9)
}
  0x18   :  { %s757_s19 = smov 128   ;;  %s758_s20 = smov 8  }
  0x19   :  { %33 = dma.hbm_to_vmem [thread:$0]  %s826_s1, 2048, %s28_s17, [#allocation6], %s757_s19, %s757_s19, %s758_s20  }
  0x1a   :  { %747 = dma.done.wait [#allocation3], 1024  }
  0x1b   :  { %748 = vsyncadd [#allocation3], 4294966272 }
  0x1c   :  { %749 = dma.done.wait [#allocation6], 2048  }
  0x1d   :  { %750 = vsyncadd [#allocation6], 4294965248  ;;  %v71_v0 = vld [vmem:[#allocation5 + $0x70] sm:$0xff]  ;;  %v72_v1 = vld [vmem:[#allocation5 + $0x78] sm:$0xff]  ;;  %s759_s0 = smov [#allocation7]  }
  0x1e   :  { %v69_v2 = vld [vmem:[#allocation5 + $0x60] sm:$0xff]  ;;  %v80_v3 = vpack.c.bf16 %v72_v1, %v71_v0  ;;  %v70_v4 = vld [vmem:[#allocation5 + $0x68] sm:$0xff]  ;;  %v67_v6 = vld [vmem:[#allocation5 + $0x50] sm:$0xff]  ;;  %s489_s1 = sshll.u32 %s759_s0, 4  ;;  %s490_s1 = int_to_ptr.vmem [resolvable:$true] %s489_s1 }
  0x1f   :  { %v79_v5 = vpack.c.bf16 %v70_v4, %v69_v2  ;;  %v68_v7 = vld [vmem:[#allocation5 + $0x58] sm:$0xff]  ;;  %v65_v8 = vld [vmem:[#allocation5 + $0x40] sm:$0xff]  ;;  %v66_v10 = vld [vmem:[#allocation5 + $0x48] sm:$0xff]  ;;  %s727_s23 = scalar_lea.vmem %s490_s1, 6144  ;;  %p732_p11 = scmp.lt.s32.totalorder %s490_s1, %s490_s1 }
  0x20   :  { %558 = vmatprep.subr.bf16.mxu0 %v80_v3  ;;  %v78_v9 = vpack.c.bf16 %v68_v7, %v67_v6  ;;  %v679_v11 = vld [vmem:[#allocation2] sm:$0xff]   ;;  %v77_v12 = vpack.c.bf16 %v66_v10, %v65_v8  ;;  %v63_v13 = vld [vmem:[#allocation5 + $0x30] sm:$0xff]  ;;  %v64_v14 = vld [vmem:[#allocation5 + $0x38] sm:$0xff]  ;;  %p728_p10 = scmp.ne.s32.totalorder %s490_s1, %s727_s23  ;;  %p733_p12 = scmp.lt.s32.totalorder %s727_s23, %s727_s23 }
  0x21   :  { %559 = vmatpush3.bf16.msra.mxu0 %v80_v3  ;;  %574 = vmatprep.mubr.bf16.mxu0 %v679_v11  ;;  %v76_v15 = vpack.c.bf16 %v64_v14, %v63_v13  ;;  %v61_v16 = vld [vmem:[#allocation5 + $0x20] sm:$0xff]  ;;  %v62_v17 = vld [vmem:[#allocation5 + $0x28] sm:$0xff]  ;;  %v59_v19 = vld [vmem:[#allocation5 + $0x10] sm:$0xff] }
  0x22   :  { %560 = vmatprep.subr.bf16.mxu0 %v79_v5  ;;  %606 = vmatprep.mubr.bf16.mxu1 %v679_v11  ;;  %v75_v18 = vpack.c.bf16 %v62_v17, %v61_v16  ;;  %v60_v20 = vld [vmem:[#allocation5 + $0x18] sm:$0xff]  ;;  %v57_v22 = vld [vmem:[#allocation5] sm:$0xff]  ;;  %v58_v23 = vld [vmem:[#allocation5 + $0x8] sm:$0xff]  ;;  %p734_p13 = por %p733_p12, %p732_p11 }
  0x23   :  { %v74_v21 = vpack.c.bf16 %v60_v20, %v59_v19  ;;  %v73_v24 = vpack.c.bf16 %v58_v23, %v57_v22  ;;  %v783_v25 = vld [vmem:[#allocation2 + $0x8] sm:$0xff]   ;;  %v785_v26 = vld [vmem:[#allocation2 + $0x10] sm:$0xff]   ;;  %v789_v27 = vld [vmem:[#allocation2 + $0x18] sm:$0xff]  }
  0x24   :  { %v791_v28 = vld [vmem:[#allocation2 + $0x20] sm:$0xff]   ;;  %v795_v29 = vld [vmem:[#allocation2 + $0x28] sm:$0xff]   ;;  %v797_v30 = vld [vmem:[#allocation2 + $0x30] sm:$0xff]   ;;  %p735_p0 = pnand %p734_p13, %p728_p10 }
  0x25   :  { %561 = vmatpush3.bf16.msra.mxu0 %v79_v5  ;;  %v801_v31 = vld [vmem:[#allocation2 + $0x38] sm:$0xff]  }
  0x26   :  { %562 = vmatprep.subr.bf16.mxu0 %v78_v9 }
  0x29   :  { %563 = vmatpush3.bf16.msra.mxu0 %v78_v9 }
  0x2a   :  { %564 = vmatprep.subr.bf16.mxu0 %v77_v12 }
  0x2d   :  { %565 = vmatpush3.bf16.msra.mxu0 %v77_v12 }
  0x2e   :  { %566 = vmatprep.subr.bf16.mxu0 %v76_v15 }
  0x31   :  { %567 = vmatpush3.bf16.msra.mxu0 %v76_v15 }
  0x32   :  { %568 = vmatprep.subr.bf16.mxu0 %v75_v18 }
  0x35   :  { %569 = vmatpush3.bf16.msra.mxu0 %v75_v18 }
  0x36   :  { %570 = vmatprep.subr.bf16.mxu0 %v74_v21 }
  0x39   :  { %571 = vmatpush3.bf16.msra.mxu0 %v74_v21 }
  0x3a   :  { %572 = vmatprep.subr.bf16.mxu0 %v73_v24 }
  0x3d   :  { %573 = vmatpush3.bf16.msra.mxu0 %v73_v24 }
  0x40   :  { %575 = vmatmul.mubr.bf16.vlgmr.msra.gmra.mxu0 %v783_v25 }
  0x41   :  { %578 = vmatprep.mubr.bf16.mxu0 %v785_v26 }
  0x48   :  { %579 = vmatmul.mubr.bf16.gmra.mxu0 %v789_v27 }
  0x49   :  { %582 = vmatprep.mubr.bf16.mxu0 %v791_v28 }
  0x50   :  { %583 = vmatmul.mubr.bf16.gmra.mxu0 %v795_v29 }
  0x51   :  { %586 = vmatprep.mubr.bf16.mxu0 %v797_v30 }
  0x58   :  { %587 = vmatmul.mubr.bf16.gmra.mxu0 %v801_v31 }
  0x59   :  { %638 = vmatprep.mubr.bf16.mxu0 %v679_v11 }
 0x100   :  { %v576_v32 = vpop.f32.mrf.mxu0 }
 0x101   :  { %442 = vst [vmem:[#allocation7 + $0x30] sm:$0xff] %v576_v32 }
 0x102   :  { %v163_v33 = vpop.f32.mrf.mxu0 }
 0x103   :  { %436 = vst [vmem:[#allocation7] sm:$0xff] %v163_v33 }
 0x104   :  { %v577_v34 = vpop.f32.mrf.mxu0 }
 0x105   :  { %445 = vst [vmem:[#allocation7 + $0x48] sm:$0xff] %v577_v34  ;;  %v227_v54 = vpack.c.bf16 %v577_v34, %v576_v32 }
 0x106   :  { %v166_v35 = vpop.f32.mrf.mxu0 }
 0x107   :  { %439 = vst [vmem:[#allocation7 + $0x18] sm:$0xff] %v166_v35  ;;  %v226_v55 = vpack.c.bf16 %v166_v35, %v163_v33 }
 0x108   :  { %v580_v36 = vpop.f32.mrf.mxu0 }
 0x109   :  { %454 = vst [vmem:[#allocation7 + $0x90] sm:$0xff] %v580_v36 }
 0x10a   :  { %v179_v37 = vpop.f32.mrf.mxu0 }
 0x10b   :  { %448 = vst [vmem:[#allocation7 + $0x60] sm:$0xff] %v179_v37 }
 0x10c   :  { %v581_v38 = vpop.f32.mrf.mxu0 }
 0x10d   :  { %457 = vst [vmem:[#allocation7 + $0xa8] sm:$0xff] %v581_v38  ;;  %v229_v52 = vpack.c.bf16 %v581_v38, %v580_v36 }
 0x10e   :  { %v182_v39 = vpop.f32.mrf.mxu0 }
 0x10f   :  { %451 = vst [vmem:[#allocation7 + $0x78] sm:$0xff] %v182_v39  ;;  %v228_v53 = vpack.c.bf16 %v182_v39, %v179_v37 }
 0x110   :  { %v584_v40 = vpop.f32.mrf.mxu0 }
 0x111   :  { %466 = vst [vmem:[#allocation7 + $0xf0] sm:$0xff] %v584_v40 }
 0x112   :  { %v195_v41 = vpop.f32.mrf.mxu0 }
 0x113   :  { %460 = vst [vmem:[#allocation7 + $0xc0] sm:$0xff] %v195_v41 }
 0x114   :  { %v585_v42 = vpop.f32.mrf.mxu0 }
 0x115   :  { %469 = vst [vmem:[#allocation7 + $0x108] sm:$0xff] %v585_v42  ;;  %v231_v50 = vpack.c.bf16 %v585_v42, %v584_v40 }
 0x116   :  { %v198_v43 = vpop.f32.mrf.mxu0 }
 0x117   :  { %463 = vst [vmem:[#allocation7 + $0xd8] sm:$0xff] %v198_v43  ;;  %v230_v51 = vpack.c.bf16 %v198_v43, %v195_v41 }
 0x118   :  { %v588_v44 = vpop.f32.mrf.mxu0 }
 0x119   :  { %478 = vst [vmem:[#allocation7 + $0x150] sm:$0xff] %v588_v44 }
 0x11a   :  { %v211_v45 = vpop.f32.mrf.mxu0 }
 0x11b   :  { %472 = vst [vmem:[#allocation7 + $0x120] sm:$0xff] %v211_v45 }
 0x11c   :  { %v589_v46 = vpop.f32.mrf.mxu0 }
 0x11d   :  { %481 = vst [vmem:[#allocation7 + $0x168] sm:$0xff] %v589_v46  ;;  %v233_v47 = vpack.c.bf16 %v589_v46, %v588_v44 }
 0x11e   :  { %v214_v48 = vpop.f32.mrf.mxu0 }
 0x11f   :  { %v232_v49 = vpack.c.bf16 %v214_v48, %v211_v45  ;;  %475 = vst [vmem:[#allocation7 + $0x138] sm:$0xff] %v214_v48  ;;  %590 = vmatprep.subr.bf16.mxu1 %v233_v47 }
 0x120   :  { %591 = vmatpush3.bf16.msra.mxu1 %v233_v47 }
 0x121   :  { %592 = vmatprep.subr.bf16.mxu1 %v232_v49 }
 0x124   :  { %593 = vmatpush3.bf16.msra.mxu1 %v232_v49 }
 0x125   :  { %594 = vmatprep.subr.bf16.mxu1 %v231_v50 }
 0x128   :  { %595 = vmatpush3.bf16.msra.mxu1 %v231_v50 }
 0x129   :  { %596 = vmatprep.subr.bf16.mxu1 %v230_v51 }
 0x12c   :  { %597 = vmatpush3.bf16.msra.mxu1 %v230_v51 }
 0x12d   :  { %598 = vmatprep.subr.bf16.mxu1 %v229_v52 }
 0x130   :  { %599 = vmatpush3.bf16.msra.mxu1 %v229_v52 }
 0x131   :  { %600 = vmatprep.subr.bf16.mxu1 %v228_v53 }
 0x134   :  { %601 = vmatpush3.bf16.msra.mxu1 %v228_v53 }
 0x135   :  { %602 = vmatprep.subr.bf16.mxu1 %v227_v54 }
 0x138   :  { %603 = vmatpush3.bf16.msra.mxu1 %v227_v54 }
 0x139   :  { %604 = vmatprep.subr.bf16.mxu1 %v226_v55 }
 0x13c   :  { %605 = vmatpush3.bf16.msra.mxu1 %v226_v55 }
 0x13f   :  { %607 = vmatmul.mubr.bf16.vlgmr.msra.gmra.mxu1 %v783_v25 }
 0x140   :  { %610 = vmatprep.mubr.bf16.mxu1 %v785_v26 }
 0x147   :  { %611 = vmatmul.mubr.bf16.gmra.mxu1 %v789_v27 }
 0x148   :  { %614 = vmatprep.mubr.bf16.mxu1 %v791_v28 }
 0x14f   :  { %615 = vmatmul.mubr.bf16.gmra.mxu1 %v795_v29 }
 0x150   :  { %618 = vmatprep.mubr.bf16.mxu1 %v797_v30 }
 0x157   :  { %619 = vmatmul.mubr.bf16.gmra.mxu1 %v801_v31 }
 0x158   :  { %646 = vmatprep.mubr.bf16.mxu1 %v791_v28 }
 0x1ff   :  { %v608_v56 = vpop.f32.mrf.mxu1 }
 0x200   :  { %443 = vst [vmem:[#allocation7 + $0x38] sm:$0xff] %v608_v56 }
 0x201   :  { %v812_v57 = vpop.f32.mrf.mxu1 }
 0x202   :  { %437 = vst [vmem:[#allocation7 + $0x8] sm:$0xff] %v812_v57 }
 0x203   :  { %v609_v58 = vpop.f32.mrf.mxu1 }
 0x204   :  { %446 = vst [vmem:[#allocation7 + $0x50] sm:$0xff] %v609_v58  ;;  %v332_v14 = vpack.c.bf16 %v609_v58, %v608_v56 }
 0x205   :  { %v271_v59 = vpop.f32.mrf.mxu1 }
 0x206   :  { %440 = vst [vmem:[#allocation7 + $0x20] sm:$0xff] %v271_v59  ;;  %v331_v15 = vpack.c.bf16 %v271_v59, %v812_v57 }
 0x207   :  { %v612_v60 = vpop.f32.mrf.mxu1 }
 0x208   :  { %455 = vst [vmem:[#allocation7 + $0x98] sm:$0xff] %v612_v60 }
 0x209   :  { %v284_v61 = vpop.f32.mrf.mxu1 }
 0x20a   :  { %449 = vst [vmem:[#allocation7 + $0x68] sm:$0xff] %v284_v61 }
 0x20b   :  { %v613_v62 = vpop.f32.mrf.mxu1 }
 0x20c   :  { %458 = vst [vmem:[#allocation7 + $0xb0] sm:$0xff] %v613_v62  ;;  %v334_v12 = vpack.c.bf16 %v613_v62, %v612_v60 }
 0x20d   :  { %v287_v63 = vpop.f32.mrf.mxu1 }
 0x20e   :  { %452 = vst [vmem:[#allocation7 + $0x80] sm:$0xff] %v287_v63  ;;  %v333_v13 = vpack.c.bf16 %v287_v63, %v284_v61 }
 0x20f   :  { %v616_v0 = vpop.f32.mrf.mxu1 }
 0x210   :  { %467 = vst [vmem:[#allocation7 + $0xf8] sm:$0xff] %v616_v0 }
 0x211   :  { %v300_v1 = vpop.f32.mrf.mxu1 }
 0x212   :  { %461 = vst [vmem:[#allocation7 + $0xc8] sm:$0xff] %v300_v1 }
 0x213   :  { %v617_v2 = vpop.f32.mrf.mxu1 }
 0x214   :  { %470 = vst [vmem:[#allocation7 + $0x110] sm:$0xff] %v617_v2  ;;  %v336_v10 = vpack.c.bf16 %v617_v2, %v616_v0 }
 0x215   :  { %v303_v3 = vpop.f32.mrf.mxu1 }
 0x216   :  { %464 = vst [vmem:[#allocation7 + $0xe0] sm:$0xff] %v303_v3  ;;  %v335_v11 = vpack.c.bf16 %v303_v3, %v300_v1 }
 0x217   :  { %v620_v4 = vpop.f32.mrf.mxu1 }
 0x218   :  { %479 = vst [vmem:[#allocation7 + $0x158] sm:$0xff] %v620_v4 }
 0x219   :  { %v316_v5 = vpop.f32.mrf.mxu1 }
 0x21a   :  { %473 = vst [vmem:[#allocation7 + $0x128] sm:$0xff] %v316_v5 }
 0x21b   :  { %v621_v6 = vpop.f32.mrf.mxu1 }
 0x21c   :  { %v338_v7 = vpack.c.bf16 %v621_v6, %v620_v4  ;;  %482 = vst [vmem:[#allocation7 + $0x170] sm:$0xff] %v621_v6 }
 0x21d   :  { %v319_v8 = vpop.f32.mrf.mxu1 }
 0x21e   :  { %v337_v9 = vpack.c.bf16 %v319_v8, %v316_v5  ;;  %476 = vst [vmem:[#allocation7 + $0x140] sm:$0xff] %v319_v8  ;;  %622 = vmatprep.subr.bf16.mxu0 %v338_v7  ;;  %654 = vmatprep.subr.bf16.mxu1 %v338_v7 }
 0x21f   :  { %623 = vmatpush3.bf16.msra.mxu0 %v338_v7  ;;  %662 = vmatpush3.bf16.msra.mxu1 %v338_v7 }
 0x220   :  { %624 = vmatprep.subr.bf16.mxu0 %v337_v9  ;;  %655 = vmatprep.subr.bf16.mxu1 %v337_v9 }
 0x223   :  { %625 = vmatpush3.bf16.msra.mxu0 %v337_v9  ;;  %663 = vmatpush3.bf16.msra.mxu1 %v337_v9 }
 0x224   :  { %626 = vmatprep.subr.bf16.mxu0 %v336_v10  ;;  %656 = vmatprep.subr.bf16.mxu1 %v336_v10 }
 0x227   :  { %627 = vmatpush3.bf16.msra.mxu0 %v336_v10  ;;  %664 = vmatpush3.bf16.msra.mxu1 %v336_v10 }
 0x228   :  { %628 = vmatprep.subr.bf16.mxu0 %v335_v11  ;;  %657 = vmatprep.subr.bf16.mxu1 %v335_v11 }
 0x22b   :  { %629 = vmatpush3.bf16.msra.mxu0 %v335_v11  ;;  %665 = vmatpush3.bf16.msra.mxu1 %v335_v11 }
 0x22c   :  { %630 = vmatprep.subr.bf16.mxu0 %v334_v12  ;;  %658 = vmatprep.subr.bf16.mxu1 %v334_v12 }
 0x22f   :  { %631 = vmatpush3.bf16.msra.mxu0 %v334_v12  ;;  %666 = vmatpush3.bf16.msra.mxu1 %v334_v12 }
 0x230   :  { %632 = vmatprep.subr.bf16.mxu0 %v333_v13  ;;  %659 = vmatprep.subr.bf16.mxu1 %v333_v13 }
 0x233   :  { %633 = vmatpush3.bf16.msra.mxu0 %v333_v13  ;;  %667 = vmatpush3.bf16.msra.mxu1 %v333_v13 }
 0x234   :  { %634 = vmatprep.subr.bf16.mxu0 %v332_v14  ;;  %660 = vmatprep.subr.bf16.mxu1 %v332_v14 }
 0x237   :  { %635 = vmatpush3.bf16.msra.mxu0 %v332_v14  ;;  %668 = vmatpush3.bf16.msra.mxu1 %v332_v14 }
 0x238   :  { %636 = vmatprep.subr.bf16.mxu0 %v331_v15  ;;  %661 = vmatprep.subr.bf16.mxu1 %v331_v15 }
 0x23b   :  { %637 = vmatpush3.bf16.msra.mxu0 %v331_v15  ;;  %669 = vmatpush3.bf16.msra.mxu1 %v331_v15 }
 0x23e   :  { %639 = vmatmul.mubr.bf16.vlgmr.msra.gmra.mxu0 %v783_v25  ;;  %647 = vmatmul.mubr.bf16.vlgmr.msra.gmra.mxu1 %v795_v29 }
 0x23f   :  { %642 = vmatprep.mubr.bf16.mxu0 %v785_v26  ;;  %650 = vmatprep.mubr.bf16.mxu1 %v797_v30 }
 0x246   :  { %643 = vmatmul.mubr.bf16.gmra.mxu0 %v789_v27  ;;  %651 = vmatmul.mubr.bf16.gmra.mxu1 %v801_v31 }
 0x2fe   :  { %v640_v16 = vpop.f32.mrf.mxu0  ;;  %v648_v17 = vpop.f32.mrf.mxu1 }
 0x2ff   :  { %444 = vst [vmem:[#allocation7 + $0x40] sm:$0xff] %v640_v16  ;;  %468 = vst [vmem:[#allocation7 + $0x100] sm:$0xff] %v648_v17 }
 0x300   :  { %v373_v18 = vpop.f32.mrf.mxu0  ;;  %v405_v19 = vpop.f32.mrf.mxu1 }
 0x301   :  { %438 = vst [vmem:[#allocation7 + $0x10] sm:$0xff] %v373_v18  ;;  %462 = vst [vmem:[#allocation7 + $0xd0] sm:$0xff] %v405_v19 }
 0x302   :  { %v641_v20 = vpop.f32.mrf.mxu0  ;;  %v649_v21 = vpop.f32.mrf.mxu1 }
 0x303   :  { %447 = vst [vmem:[#allocation7 + $0x58] sm:$0xff] %v641_v20  ;;  %471 = vst [vmem:[#allocation7 + $0x118] sm:$0xff] %v649_v21 }
 0x304   :  { %v376_v22 = vpop.f32.mrf.mxu0  ;;  %v408_v23 = vpop.f32.mrf.mxu1 }
 0x305   :  { %441 = vst [vmem:[#allocation7 + $0x28] sm:$0xff] %v376_v22  ;;  %465 = vst [vmem:[#allocation7 + $0xe8] sm:$0xff] %v408_v23 }
 0x306   :  { %v644_v24 = vpop.f32.mrf.mxu0  ;;  %v652_v25 = vpop.f32.mrf.mxu1 }
 0x307   :  { %456 = vst [vmem:[#allocation7 + $0xa0] sm:$0xff] %v644_v24  ;;  %480 = vst [vmem:[#allocation7 + $0x160] sm:$0xff] %v652_v25 }
 0x308   :  { %v389_v26 = vpop.f32.mrf.mxu0  ;;  %v421_v27 = vpop.f32.mrf.mxu1 }
 0x309   :  { %450 = vst [vmem:[#allocation7 + $0x70] sm:$0xff] %v389_v26  ;;  %474 = vst [vmem:[#allocation7 + $0x130] sm:$0xff] %v421_v27 }
 0x30a   :  { %v645_v28 = vpop.f32.mrf.mxu0  ;;  %v653_v29 = vpop.f32.mrf.mxu1 }
 0x30b   :  { %459 = vst [vmem:[#allocation7 + $0xb8] sm:$0xff] %v645_v28  ;;  %483 = vst [vmem:[#allocation7 + $0x178] sm:$0xff] %v653_v29 }
 0x30c   :  { %v392_v30 = vpop.f32.mrf.mxu0  ;;  %v424_v31 = vpop.f32.mrf.mxu1 }
 0x30d   :  { %453 = vst [vmem:[#allocation7 + $0x88] sm:$0xff] %v392_v30  ;;  %477 = vst [vmem:[#allocation7 + $0x148] sm:$0xff] %v424_v31 }
 0x30e   :  { %738 = shalt.err (!%p735_p0)
}
 0x30f   :  { %s760_s24 = smov 384   ;;  %s761_s25 = smov 24  }
 0x310   :  { %495 = dma.vmem_to_hbm [thread:$0]  %s490_s1, 6144, %s827_s2, [#allocation4], %s760_s24, %s760_s24, %s761_s25  }
 0x311   :  { %751 = dma.done.wait [#allocation4], 6144  }
 0x312   :  { %752 = vsyncadd [#allocation4], 4294961152 }
 0x313   :  { %499 = vsyncpa [#allocation3], 1 }
 0x314   :  { %500 = vsyncpa [#allocation6], 1 }
 0x315   :  { %501 = vsyncpa [#allocation4], 1 }

</bundles_post_ra>
